<compile_context>
chip_gen: v6e
topology: v6e:2x2x1
jax: 0.10.0
libtpu: 0.0.40
codegen_flags: <defaults>
</compile_context>

<pallas_src>
import numpy as np
import jax
import jax.numpy as jnp
from jax.experimental import pallas as pl
from jax.experimental.pallas import tpu as pltpu  # noqa: F401

# ---- static configuration ---------------------------------------------------
B, L = 2, 8          # batch, sequence length
BL = B * L           # flattened token rows
H = 32               # config.hidden_size
I = 64               # config.intermediate_size
K = 4                # conv1d_configs.kernel_sizes
GROUPS = 8           # conv1d groups
RMS_EPS = 1e-5       # MetaRMSNorm eps (config.layer_norm_epsilon)
LN_EPS = 1e-5        # ln_2 eps

# bf16 weight-slab row offsets (all multiples of 16 sublanes)
_OFF_WHS = 0          # in_proj[:, :I]      padded to (I, I)
_OFF_WGATE = 64       # in_proj[:, I:]      padded to (I, I)
_OFF_WCONV = 128      # conv taps           (K*I, I)
_OFF_WFC = 384        # mlp.c_fc            padded to (I, I)
_OFF_WPROJ = 448      # mlp.c_proj          padded to (I, I)
_OFF_WOUT = 512       # out_proj            padded to (I, I)
_OFF_SHIFT = 576      # causal shift matrices, stacked ((K-1)*BL, BL)
_NSHIFT = (K - 1) * BL            # 48
_W64_ROWS = _OFF_SHIFT + _NSHIFT  # 624

# f32 vec/x slab rows
_ROW_X = 8            # x occupies rows 8 .. 8+BL-1


# ---- Pallas kernel: full MetaBlock forward, both batch rows at once ---------
def metablock_kernel(w64_ref, vx_ref, o_ref):
    # packed bf16 parameters (static, tile-aligned slices)
    w_hs = w64_ref[_OFF_WHS:_OFF_WHS + I, :]              # (I, I) rows>=H are 0
    w_gate = w64_ref[_OFF_WGATE:_OFF_WGATE + I, :]        # (I, I)
    w_conv = w64_ref[_OFF_WCONV:_OFF_WCONV + K * I, :]    # (K*I, I)
    w_fc = w64_ref[_OFF_WFC:_OFF_WFC + I, :]              # (I, I) cols>=H are 0
    w_proj = w64_ref[_OFF_WPROJ:_OFF_WPROJ + I, :]        # (I, I) rows>=H are 0
    w_out = w64_ref[_OFF_WOUT:_OFF_WOUT + I, :]           # (I, I) cols>=H are 0
    s_stack = w64_ref[_OFF_SHIFT:_OFF_SHIFT + _NSHIFT, 0:BL]   # (48, 16) 0/1

    # f32 vectors + activations
    rmsw = vx_ref[0:1, :]                                 # (1, I) cols>=H are 0
    bconv = vx_ref[1:2, :]
    lnw = vx_ref[2:3, :]
    lnb = vx_ref[3:4, :]
    bfc = vx_ref[4:5, :]                                  # cols>=H are 0
    bproj = vx_ref[5:6, :]
    x = vx_ref[_ROW_X:_ROW_X + BL, :]                     # (BL, I) f32, cols>=H 0

    # --- MetaRMSNorm (f32 statistics; padding columns are exact zeros) ---
    var = jnp.sum(x * x, axis=-1, keepdims=True) * (1.0 / H)
    xn = x * jax.lax.rsqrt(var + RMS_EPS) * rmsw
    xn_b = xn.astype(jnp.bfloat16)

    # --- in_proj split into hs / gate halves ---
    hs = jnp.dot(xn_b, w_hs, preferred_element_type=jnp.float32)      # (BL, I)
    gate = jnp.dot(xn_b, w_gate, preferred_element_type=jnp.float32)  # (BL, I)

    # --- causal grouped Conv1d ---
    # All K-1 shifted copies of hs come from ONE matmul against precomputed
    # 0/1 shift matrices (stacked, host-built); the conv is then a single
    # (BL, K*I) @ (K*I, I) contraction.
    hs_b = hs.astype(jnp.bfloat16)
    shifted = jnp.dot(s_stack, hs_b, preferred_element_type=jnp.float32)  # (48, I)
    shifted_b = shifted.astype(jnp.bfloat16)
    stacked = jnp.concatenate(
        [shifted_b[0:BL, :],          # tap k=0  (shift s=3)
         shifted_b[BL:2 * BL, :],     # tap k=1  (shift s=2)
         shifted_b[2 * BL:3 * BL, :], # tap k=2  (shift s=1)
         hs_b],                       # tap k=3  (shift s=0)
        axis=-1)                                                       # (BL, K*I)
    conv = jnp.dot(stacked, w_conv, preferred_element_type=jnp.float32) + bconv

    # --- gate with SiLU (f32) ---
    gated = conv * (gate * jax.nn.sigmoid(gate))          # (BL, I), MLP residual

    # --- ln_2 (f32 statistics over the full I=64 channels) ---
    mu = jnp.mean(gated, axis=-1, keepdims=True)
    v = jnp.mean((gated - mu) ** 2, axis=-1, keepdims=True)
    ln = (gated - mu) * jax.lax.rsqrt(v + LN_EPS) * lnw + lnb

    # --- MLP: c_fc -> SiLU -> c_proj (dropout = identity), + residual ---
    h1 = jnp.dot(ln.astype(jnp.bfloat16), w_fc,
                 preferred_element_type=jnp.float32) + bfc             # cols>=H stay 0
    h1 = h1 * jax.nn.sigmoid(h1)
    h2 = jnp.dot(h1.astype(jnp.bfloat16), w_proj,
                 preferred_element_type=jnp.float32) + bproj
    hs2 = h2 + gated

    # --- out_proj + MetaBlock residual (kept in fp32) ---
    out = jnp.dot(hs2.astype(jnp.bfloat16), w_out,
                  preferred_element_type=jnp.float32)                  # cols>=H are 0
    res = x + out
    o_ref[...] = res[:, :H]


# ---- host-side, one-time packing (runs OUTSIDE the jitted per-call path) ----
def _build_shift_stack():
    """Stacked 0/1 causal shift matrices S_s for s = K-1..1 (batch-local)."""
    s_np = np.zeros((_NSHIFT, BL), np.float32)
    for idx in range(K - 1):
        s = K - 1 - idx                    # tap k=idx uses shift s = K-1-k
        for t in range(BL):
            if (t % L) >= s:               # stay inside the batch segment
                s_np[idx * BL + t, t - s] = 1.0
    return s_np


def pack_params(params):
    (rmsw, win, wconv, bconv, lnw, lnb, wfc, bfc, wproj, bproj, wout) = params

    def pad_rows(w):
        return jnp.pad(w, ((0, I - w.shape[0]), (0, 0)))

    def pad_cols(w):
        return jnp.pad(w, ((0, 0), (0, I - w.shape[1])))

    w_hs_p = pad_rows(win[:, :I])                     # (I, I)
    w_gate_p = pad_rows(win[:, I:])                   # (I, I)
    wconv_flat = wconv.reshape(K * I, I)              # (K*I, I)
    w_fc_p = pad_cols(wfc)                            # (I, I)
    w_proj_p = pad_rows(wproj)                        # (I, I)
    w_out_p = pad_cols(wout)                          # (I, I)
    shifts = pad_cols(jnp.asarray(_build_shift_stack()))  # (48, I)

    w64 = jnp.concatenate(
        [w_hs_p, w_gate_p, wconv_flat, w_fc_p, w_proj_p, w_out_p, shifts],
        axis=0).astype(jnp.bfloat16)                  # (624, 64) bf16

    vec = jnp.zeros((8, I), jnp.float32)
    vec = vec.at[0, :H].set(rmsw.reshape(-1))
    vec = vec.at[1, :].set(bconv.reshape(-1))
    vec = vec.at[2, :].set(lnw.reshape(-1))
    vec = vec.at[3, :].set(lnb.reshape(-1))
    vec = vec.at[4, :H].set(bfc.reshape(-1))
    vec = vec.at[5, :].set(bproj.reshape(-1))
    return w64, vec


# ---- jitted per-call wrapper: only x handling + the single pallas_call ------
@jax.jit
def metablock_pallas(x, w64, vec_hdr):
    x2 = x.reshape(BL, H).astype(jnp.float32)
    x_pad = jnp.pad(x2, ((0, 0), (0, I - H)))          # (BL, 64)
    vecx = jnp.concatenate([vec_hdr, x_pad], axis=0)   # (8 + BL, 64) f32 slab
    out = pl.pallas_call(                               # single invocation, no grid
        metablock_kernel,
        out_shape=jax.ShapeDtypeStruct((BL, H), jnp.float32),
    )(w64, vecx)
    return out.reshape(B, L, H)


# ---- pure-JAX reference (module semantics, f32) -----------------------------
def metablock_ref(x, params):
    (rmsw, win, wconv, bconv, lnw, lnb, wfc, bfc, wproj, bproj, wout) = params

    def one(xb):
        xb = xb.astype(jnp.float32)
        var = jnp.mean(xb * xb, axis=-1, keepdims=True)
        xn = xb * jax.lax.rsqrt(var + RMS_EPS) * rmsw
        proj = xn @ win
        hs, gate = proj[:, :I], proj[:, I:]
        hs_pad = jnp.concatenate([jnp.zeros((K - 1, I), jnp.float32), hs], 0)
        conv = sum(hs_pad[k:k + L] @ wconv[k] for k in range(K)) + bconv
        gated = conv * (gate * jax.nn.sigmoid(gate))
        mu = jnp.mean(gated, -1, keepdims=True)
        v = jnp.mean((gated - mu) ** 2, -1, keepdims=True)
        ln = (gated - mu) * jax.lax.rsqrt(v + LN_EPS) * lnw + lnb
        h1 = ln @ wfc + bfc
        h1 = h1 * jax.nn.sigmoid(h1)
        h2 = h1 @ wproj + bproj
        return xb + (h2 + gated) @ wout

    return jax.vmap(one)(x)


# ---- deterministic parameter construction -----------------------------------
def make_params(key):
    ks = jax.random.split(key, 12)
    scale = 0.1
    rmsw = jnp.ones((1, H), jnp.float32)                              # MetaRMSNorm
    win = scale * jax.random.normal(ks[0], (H, 2 * I), jnp.float32)   # in_proj

    # grouped conv weight as in torch: (out=I, in_per_group=I//G, K)
    wg = scale * jax.random.normal(ks[1], (I, I // GROUPS, K), jnp.float32)
    bconv = scale * jax.random.normal(ks[2], (1, I), jnp.float32)
    # expand to dense block-diagonal, stacked by tap: (K, I_in, I_out)
    cg = I // GROUPS
    wconv_np = np.zeros((K, I, I), np.float32)
    wg_np = np.asarray(wg)
    for o in range(I):
        g = o // cg
        wconv_np[:, g * cg:(g + 1) * cg, o] = wg_np[o].T              # (K, cg)
    wconv = jnp.asarray(wconv_np)

    lnw = jnp.ones((1, I), jnp.float32)                               # ln_2
    lnb = jnp.zeros((1, I), jnp.float32)

    wfc = scale * jax.random.normal(ks[3], (I, H), jnp.float32)       # MLP.c_fc
    bfc = scale * jax.random.normal(ks[4], (1, H), jnp.float32)
    wproj = scale * jax.random.normal(ks[5], (H, I), jnp.float32)     # MLP.c_proj
    bproj = scale * jax.random.normal(ks[6], (1, I), jnp.float32)

    wout = scale * jax.random.normal(ks[7], (I, H), jnp.float32)      # out_proj
    return (rmsw, win, wconv, bconv, lnw, lnb, wfc, bfc, wproj, bproj, wout)


if __name__ == "__main__":
    key = jax.random.PRNGKey(0)
    kx, kp = jax.random.split(key)
    x = jax.random.normal(kx, (B, L, H), jnp.float32)
    params = make_params(kp)

    # Pack weights ONCE (outside the jitted per-call path) and keep resident.
    w64, vec_hdr = pack_params(params)
    w64 = jax.device_put(w64)
    vec_hdr = jax.device_put(vec_hdr)

    out = jax.block_until_ready(metablock_pallas(x, w64, vec_hdr))
    ref = jax.block_until_ready(metablock_ref(x, params))

    assert out.shape == (B, L, H)
    assert np.all(np.isfinite(np.asarray(out)))
    # bf16 MXU operands in the kernel (f32 reference) -> relaxed tolerance.
    np.testing.assert_allclose(np.asarray(out), np.asarray(ref), rtol=2e-2, atol=2e-2)
    print("KERNEL_OK")
</pallas_src>

<mosaic_0001>
module attributes {stable_mosaic.version = 11 : i64} {
  func.func @metablock_kernel(%arg0: memref<624x64xbf16, #tpu.memory_space<vmem>>, %arg1: memref<24x64xf32, #tpu.memory_space<vmem>>, %arg2: memref<16x32xf32, #tpu.memory_space<vmem>>) attributes {dimension_semantics = [], scalar_prefetch = 0 : i64, scratch_operands = 0 : i64, tpu.core_type = #tpu.core_type<tc>} {
    %c0 = arith.constant 0 : index
    %c0_0 = arith.constant 0 : index
    %0 = vector.load %arg0[%c0, %c0_0] : memref<624x64xbf16, #tpu.memory_space<vmem>>, vector<64x64xbf16>
    %c64 = arith.constant 64 : index
    %c0_1 = arith.constant 0 : index
    %1 = vector.load %arg0[%c64, %c0_1] : memref<624x64xbf16, #tpu.memory_space<vmem>>, vector<64x64xbf16>
    %c128 = arith.constant 128 : index
    %c0_2 = arith.constant 0 : index
    %2 = vector.load %arg0[%c128, %c0_2] : memref<624x64xbf16, #tpu.memory_space<vmem>>, vector<256x64xbf16>
    %c384 = arith.constant 384 : index
    %c0_3 = arith.constant 0 : index
    %3 = vector.load %arg0[%c384, %c0_3] : memref<624x64xbf16, #tpu.memory_space<vmem>>, vector<64x64xbf16>
    %c448 = arith.constant 448 : index
    %c0_4 = arith.constant 0 : index
    %4 = vector.load %arg0[%c448, %c0_4] : memref<624x64xbf16, #tpu.memory_space<vmem>>, vector<64x64xbf16>
    %c512 = arith.constant 512 : index
    %c0_5 = arith.constant 0 : index
    %5 = vector.load %arg0[%c512, %c0_5] : memref<624x64xbf16, #tpu.memory_space<vmem>>, vector<64x64xbf16>
    %c576 = arith.constant 576 : index
    %c0_6 = arith.constant 0 : index
    %6 = vector.load %arg0[%c576, %c0_6] : memref<624x64xbf16, #tpu.memory_space<vmem>>, vector<48x16xbf16>
    %c0_7 = arith.constant 0 : index
    %c0_8 = arith.constant 0 : index
    %7 = vector.load %arg1[%c0_7, %c0_8] : memref<24x64xf32, #tpu.memory_space<vmem>>, vector<1x64xf32>
    %c1 = arith.constant 1 : index
    %c0_9 = arith.constant 0 : index
    %8 = vector.load %arg1[%c1, %c0_9] : memref<24x64xf32, #tpu.memory_space<vmem>>, vector<1x64xf32>
    %c2 = arith.constant 2 : index
    %c0_10 = arith.constant 0 : index
    %9 = vector.load %arg1[%c2, %c0_10] : memref<24x64xf32, #tpu.memory_space<vmem>>, vector<1x64xf32>
    %c3 = arith.constant 3 : index
    %c0_11 = arith.constant 0 : index
    %10 = vector.load %arg1[%c3, %c0_11] : memref<24x64xf32, #tpu.memory_space<vmem>>, vector<1x64xf32>
    %c4 = arith.constant 4 : index
    %c0_12 = arith.constant 0 : index
    %11 = vector.load %arg1[%c4, %c0_12] : memref<24x64xf32, #tpu.memory_space<vmem>>, vector<1x64xf32>
    %c5 = arith.constant 5 : index
    %c0_13 = arith.constant 0 : index
    %12 = vector.load %arg1[%c5, %c0_13] : memref<24x64xf32, #tpu.memory_space<vmem>>, vector<1x64xf32>
    %c8 = arith.constant 8 : index
    %c0_14 = arith.constant 0 : index
    %13 = vector.load %arg1[%c8, %c0_14] : memref<24x64xf32, #tpu.memory_space<vmem>>, vector<16x64xf32>
    %14 = arith.mulf %13, %13 : vector<16x64xf32>
    %cst = arith.constant dense<0.000000e+00> : vector<16xf32>
    %15 = vector.multi_reduction <add>, %14, %cst [1] : vector<16x64xf32> to vector<16xf32>
    %16 = vector.shape_cast %15 : vector<16xf32> to vector<16x1xf32>
    %cst_15 = arith.constant 3.125000e-02 : f32
    %17 = vector.broadcast %cst_15 : f32 to vector<16x1xf32>
    %18 = arith.mulf %16, %17 : vector<16x1xf32>
    %cst_16 = arith.constant 9.99999974E-6 : f32
    %19 = vector.broadcast %cst_16 : f32 to vector<16x1xf32>
    %20 = arith.addf %18, %19 : vector<16x1xf32>
    %21 = math.rsqrt %20 : vector<16x1xf32>
    %22 = vector.broadcast %21 : vector<16x1xf32> to vector<16x64xf32>
    %23 = arith.mulf %13, %22 : vector<16x64xf32>
    %24 = vector.broadcast %7 : vector<1x64xf32> to vector<16x64xf32>
    %25 = arith.mulf %23, %24 : vector<16x64xf32>
    %26 = arith.truncf %25 : vector<16x64xf32> to vector<16x64xbf16>
    %cst_17 = arith.constant dense<0.000000e+00> : vector<16x64xf32>
    %27 = tpu.matmul %26, %0, %cst_17 {dimension_numbers = #tpu.dot_dimension_numbers<[1], [0], [0], [1], [0, 0, 1, 1], [], []>} : vector<16x64xbf16>, vector<64x64xbf16>, vector<16x64xf32> -> vector<16x64xf32>
    %cst_18 = arith.constant dense<0.000000e+00> : vector<16x64xf32>
    %28 = tpu.matmul %26, %1, %cst_18 {dimension_numbers = #tpu.dot_dimension_numbers<[1], [0], [0], [1], [0, 0, 1, 1], [], []>} : vector<16x64xbf16>, vector<64x64xbf16>, vector<16x64xf32> -> vector<16x64xf32>
    %29 = arith.truncf %27 : vector<16x64xf32> to vector<16x64xbf16>
    %cst_19 = arith.constant dense<0.000000e+00> : vector<48x64xf32>
    %30 = tpu.matmul %6, %29, %cst_19 {dimension_numbers = #tpu.dot_dimension_numbers<[1], [0], [0], [1], [0, 0, 1, 1], [], []>} : vector<48x16xbf16>, vector<16x64xbf16>, vector<48x64xf32> -> vector<48x64xf32>
    %31 = arith.truncf %30 : vector<48x64xf32> to vector<48x64xbf16>
    %32 = vector.extract_strided_slice %31 {offsets = [0, 0], sizes = [16, 64], strides = [1, 1]} : vector<48x64xbf16> to vector<16x64xbf16>
    %33 = vector.extract_strided_slice %31 {offsets = [16, 0], sizes = [16, 64], strides = [1, 1]} : vector<48x64xbf16> to vector<16x64xbf16>
    %34 = vector.extract_strided_slice %31 {offsets = [32, 0], sizes = [16, 64], strides = [1, 1]} : vector<48x64xbf16> to vector<16x64xbf16>
    %35 = tpu.concatenate %32, %33, %34, %29 in 1 : vector<16x64xbf16>, vector<16x64xbf16>, vector<16x64xbf16>, vector<16x64xbf16> -> vector<16x256xbf16>
    %cst_20 = arith.constant dense<0.000000e+00> : vector<16x64xf32>
    %36 = tpu.matmul %35, %2, %cst_20 {dimension_numbers = #tpu.dot_dimension_numbers<[1], [0], [0], [1], [0, 0, 1, 1], [], []>} : vector<16x256xbf16>, vector<256x64xbf16>, vector<16x64xf32> -> vector<16x64xf32>
    %37 = vector.broadcast %8 : vector<1x64xf32> to vector<16x64xf32>
    %38 = arith.addf %36, %37 : vector<16x64xf32>
    %39 = arith.negf %28 : vector<16x64xf32>
    %40 = math.exp %39 : vector<16x64xf32>
    %cst_21 = arith.constant 1.000000e+00 : f32
    %41 = vector.broadcast %cst_21 : f32 to vector<16x64xf32>
    %42 = arith.addf %41, %40 : vector<16x64xf32>
    %43 = arith.divf %41, %42 : vector<16x64xf32>
    %44 = arith.mulf %28, %43 : vector<16x64xf32>
    %45 = arith.mulf %38, %44 : vector<16x64xf32>
    %cst_22 = arith.constant dense<0.000000e+00> : vector<16xf32>
    %46 = vector.multi_reduction <add>, %45, %cst_22 [1] : vector<16x64xf32> to vector<16xf32>
    %47 = vector.shape_cast %46 : vector<16xf32> to vector<16x1xf32>
    %cst_23 = arith.constant 6.400000e+01 : f32
    %48 = vector.broadcast %cst_23 : f32 to vector<16x1xf32>
    %49 = arith.divf %47, %48 : vector<16x1xf32>
    %50 = vector.broadcast %49 : vector<16x1xf32> to vector<16x64xf32>
    %51 = arith.subf %45, %50 : vector<16x64xf32>
    %52 = arith.mulf %51, %51 : vector<16x64xf32>
    %cst_24 = arith.constant dense<0.000000e+00> : vector<16xf32>
    %53 = vector.multi_reduction <add>, %52, %cst_24 [1] : vector<16x64xf32> to vector<16xf32>
    %54 = vector.shape_cast %53 : vector<16xf32> to vector<16x1xf32>
    %cst_25 = arith.constant 6.400000e+01 : f32
    %55 = vector.broadcast %cst_25 : f32 to vector<16x1xf32>
    %56 = arith.divf %54, %55 : vector<16x1xf32>
    %57 = vector.broadcast %49 : vector<16x1xf32> to vector<16x64xf32>
    %58 = arith.subf %45, %57 : vector<16x64xf32>
    %cst_26 = arith.constant 9.99999974E-6 : f32
    %59 = vector.broadcast %cst_26 : f32 to vector<16x1xf32>
    %60 = arith.addf %56, %59 : vector<16x1xf32>
    %61 = math.rsqrt %60 : vector<16x1xf32>
    %62 = vector.broadcast %61 : vector<16x1xf32> to vector<16x64xf32>
    %63 = arith.mulf %58, %62 : vector<16x64xf32>
    %64 = vector.broadcast %9 : vector<1x64xf32> to vector<16x64xf32>
    %65 = arith.mulf %63, %64 : vector<16x64xf32>
    %66 = vector.broadcast %10 : vector<1x64xf32> to vector<16x64xf32>
    %67 = arith.addf %65, %66 : vector<16x64xf32>
    %68 = arith.truncf %67 : vector<16x64xf32> to vector<16x64xbf16>
    %cst_27 = arith.constant dense<0.000000e+00> : vector<16x64xf32>
    %69 = tpu.matmul %68, %3, %cst_27 {dimension_numbers = #tpu.dot_dimension_numbers<[1], [0], [0], [1], [0, 0, 1, 1], [], []>} : vector<16x64xbf16>, vector<64x64xbf16>, vector<16x64xf32> -> vector<16x64xf32>
    %70 = vector.broadcast %11 : vector<1x64xf32> to vector<16x64xf32>
    %71 = arith.addf %69, %70 : vector<16x64xf32>
    %72 = arith.negf %71 : vector<16x64xf32>
    %73 = math.exp %72 : vector<16x64xf32>
    %cst_28 = arith.constant 1.000000e+00 : f32
    %74 = vector.broadcast %cst_28 : f32 to vector<16x64xf32>
    %75 = arith.addf %74, %73 : vector<16x64xf32>
    %76 = arith.divf %74, %75 : vector<16x64xf32>
    %77 = arith.mulf %71, %76 : vector<16x64xf32>
    %78 = arith.truncf %77 : vector<16x64xf32> to vector<16x64xbf16>
    %cst_29 = arith.constant dense<0.000000e+00> : vector<16x64xf32>
    %79 = tpu.matmul %78, %4, %cst_29 {dimension_numbers = #tpu.dot_dimension_numbers<[1], [0], [0], [1], [0, 0, 1, 1], [], []>} : vector<16x64xbf16>, vector<64x64xbf16>, vector<16x64xf32> -> vector<16x64xf32>
    %80 = vector.broadcast %12 : vector<1x64xf32> to vector<16x64xf32>
    %81 = arith.addf %79, %80 : vector<16x64xf32>
    %82 = arith.addf %81, %45 : vector<16x64xf32>
    %83 = arith.truncf %82 : vector<16x64xf32> to vector<16x64xbf16>
    %cst_30 = arith.constant dense<0.000000e+00> : vector<16x64xf32>
    %84 = tpu.matmul %83, %5, %cst_30 {dimension_numbers = #tpu.dot_dimension_numbers<[1], [0], [0], [1], [0, 0, 1, 1], [], []>} : vector<16x64xbf16>, vector<64x64xbf16>, vector<16x64xf32> -> vector<16x64xf32>
    %85 = arith.addf %13, %84 : vector<16x64xf32>
    %86 = vector.extract_strided_slice %85 {offsets = [0, 0], sizes = [16, 32], strides = [1, 1]} : vector<16x64xf32> to vector<16x32xf32>
    %c0_31 = arith.constant 0 : index
    %c0_32 = arith.constant 0 : index
    %87 = vector.load %arg2[%c0_31, %c0_32] : memref<16x32xf32, #tpu.memory_space<vmem>>, vector<16x32xf32>
    tpu.vector_store %arg2[%c0_31, %c0_32], %86 {strides = array<i32>} : memref<16x32xf32, #tpu.memory_space<vmem>>, vector<16x32xf32>,
    return
  }
}

</mosaic_0001>

<bundles_post_ra>
// kernel: metablock_pallas.1
= control target key start
LH: loop header
LB: loop body
LE: loop exit
PB: predicated region body
PF: predicated region fallthrough
CT: control target
= control target key end

     0   :  { %vm101_vm0 = vcmask 523264   ;;  %v1077_v8 = vmov 0.0   ;;  %vm1078_vm1 = vmmov 0   ;;  %s1324_s0 = inlined_call_operand.vmem [shape: bf16[624,64], index: 0, kind: input, shape index: {}]   ;;  %s1325_s1 = inlined_call_operand.vmem [shape: f32[24,64], index: 1, kind: input, shape index: {}]   ;;  %s1326_s2 = inlined_call_operand.hbm [shape: f32[16,32], index: 2, kind: output, shape index: {}]  }
   0x1   :  { %v1101_v0 = vld [vmem:[%s1325_s1 + $0x8] sm:$0xff]  ;;  %v1106_v1 = vld [vmem:[%s1325_s1 + $0x10] sm:$0xff]  ;;  %v992_v6 = vld [vmem:[%s1324_s0 + $0x18] sm:$0xff]   ;;  %912 = vmatprep.subr.bf16.mxu0 %v1077_v8  ;;  %924 = vmatprep.subr.bf16.mxu1 %v1077_v8 }
   0x2   :  { %v99_v2 = vmul.f32 %v1101_v0, %v1101_v0  ;;  %v100_v3 = vmul.f32 %v1106_v1, %v1106_v1  ;;  %v993_v7 = vld [vmem:[%s1324_s0 + $0x38] sm:$0xff]   ;;  %913 = vmatpush3.bf16.msra.mxu0 %v992_v6  ;;  %v994_v9 = vld [vmem:[%s1324_s0 + $0x10] sm:$0xff]   ;;  %v996_v11 = vld [vmem:[%s1324_s0 + $0x8] sm:$0xff]   ;;  %920 = vmatprep.mubr.msk.bf16.mxu0 %vm1078_vm1, %v1077_v8 }
   0x3   :  { %925 = vmatpush3.bf16.msra.mxu1 %v993_v7  ;;  %v995_v10 = vld [vmem:[%s1324_s0 + $0x30] sm:$0xff]   ;;  %914 = vmatprep.subr.bf16.mxu0 %v1077_v8  ;;  %v997_v12 = vld [vmem:[%s1324_s0 + $0x28] sm:$0xff]  }
   0x4   :  { %v102_v4 = vsel %vm101_vm0, %v99_v2, 0.0  ;;  %v105_v5 = vsel %vm101_vm0, %v100_v3, 0.0  ;;  %926 = vmatprep.subr.bf16.mxu1 %v1077_v8  ;;  %932 = vmatprep.mubr.msk.bf16.mxu1 %vm1078_vm1, %v1077_v8 }
   0x5   :  { %103 = vadd.xlane.f32.xlu0 %v102_v4 }
   0x6   :  { %915 = vmatpush3.bf16.msra.mxu0 %v994_v9 }
   0x7   :  { %927 = vmatpush3.bf16.msra.mxu1 %v995_v10  ;;  %916 = vmatprep.subr.bf16.mxu0 %v1077_v8 }
   0x8   :  { %928 = vmatprep.subr.bf16.mxu1 %v1077_v8 }
   0x9   :  { %106 = vadd.xlane.f32.xlu0 %v105_v5 }
   0xa   :  { %7 = vsyncpa [#allocation3], 0  ;;  %917 = vmatpush3.bf16.msra.mxu0 %v996_v11  ;;  %v998_v13 = vld [vmem:[%s1324_s0] sm:$0xff]   ;;  %s1079_s5 = smov 64   ;;  %vm272_vm2 = vcmask 130048   ;;  %v1001_v39 = vld [vmem:[%s1324_s0 + $0x128] sm:$0xff]  }
   0xb   :  { %929 = vmatpush3.bf16.msra.mxu1 %v997_v12  ;;  %v999_v14 = vld [vmem:[%s1324_s0 + $0x20] sm:$0xff]   ;;  %918 = vmatprep.subr.bf16.mxu0 %v1077_v8  ;;  %v1002_v40 = vld [vmem:[%s1324_s0 + $0x130] sm:$0xff]   ;;  %v1003_v41 = vld [vmem:[%s1324_s0 + $0xb8] sm:$0xff]   ;;  %vm785_vm3 = vcmask 261120  }
   0xc   :  { %930 = vmatprep.subr.bf16.mxu1 %v1077_v8  ;;  %v804_v24 = vld [vmem:[%s1325_s1] ss:$0 sm:$0xff]  ;;  %v1004_v42 = vld [vmem:[%s1324_s0 + $0x78] sm:$0xff]   ;;  %v1005_v43 = vld [vmem:[%s1324_s0 + $0xb0] sm:$0xff]  }
   0xd   :  { %v1000_v38 = vld [vmem:[%s1324_s0 + $0x120] sm:$0xff]   ;;  %v1006_v44 = vld [vmem:[%s1324_s0 + $0x70] sm:$0xff]   ;;  %v1007_v45 = vld [vmem:[%s1324_s0 + $0xa8] sm:$0xff]  }
   0xe   :  { %919 = vmatpush3.bf16.msra.mxu0 %v998_v13  ;;  %v1008_v46 = vld [vmem:[%s1324_s0 + $0x68] sm:$0xff]   ;;  %v1009_v47 = vld [vmem:[%s1324_s0 + $0xa0] sm:$0xff]   ;;  %v1011_v49 = vld [vmem:[%s1324_s0 + $0x98] sm:$0xff]  }
   0xf   :  { %931 = vmatpush3.bf16.msra.mxu1 %v999_v14  ;;  %936 = vmatprep.subr.bf16.mxu0 %v1077_v8  ;;  %v1010_v48 = vld [vmem:[%s1324_s0 + $0x60] sm:$0xff]   ;;  %v1012_v50 = vld [vmem:[%s1324_s0 + $0x58] sm:$0xff]   ;;  %v1013_v51 = vld [vmem:[%s1324_s0 + $0x90] sm:$0xff]  }
  0x10   :  { %875 = vmatprep.subr.bf16.mxu1 %v1003_v41  ;;  %v1014_v52 = vld [vmem:[%s1324_s0 + $0x50] sm:$0xff]   ;;  %v1015_v53 = vld [vmem:[%s1324_s0 + $0x88] sm:$0xff]   ;;  %v1017_v55 = vld [vmem:[%s1324_s0 + $0x80] sm:$0xff]  }
  0x11   :  { %v1016_v54 = vld [vmem:[%s1324_s0 + $0x48] sm:$0xff]   ;;  %v1018_v56 = vld [vmem:[%s1324_s0 + $0x40] sm:$0xff]  }
  0x8e   :  { %v104_v15 = vpop.xlane.xlu0 %103 }
  0x8f   :  { %v108_v16 = vmul.f32 0.03125, %v104_v15 }
  0x91   :  { %v110_v17 = vadd.f32 1e-05, %v108_v16 }
  0x92   :  { %v107_v18 = vpop.xlane.xlu0 %106 }
  0x93   :  { %1031 = vrsqrt.f32 %v110_v17  ;;  %v109_v19 = vmul.f32 0.03125, %v107_v18 }
  0x95   :  { %v111_v20 = vadd.f32 1e-05, %v109_v19 }
  0x97   :  { %1033 = vrsqrt.f32 %v111_v20 }
  0xa0   :  { %v1032_v21 = vpop.eup %1031 }
  0xa1   :  { %v114_v22 = vmul.f32 %v1032_v21, %v1101_v0 }
  0xa3   :  { %v120_v26 = vmul.f32 %v804_v24, %v114_v22 }
  0xa4   :  { %v1034_v23 = vpop.eup %1033 }
  0xa5   :  { %v115_v25 = vmul.f32 %v1034_v23, %v1106_v1  ;;  %v821_v23 = vld [vmem:[%s1325_s1 + $0x1] ss:$0 sm:$0xff] }
  0xa7   :  { %v121_v27 = vmul.f32 %v804_v24, %v115_v25 }
  0xa9   :  { %v122_v28 = vpack.c.bf16 %v121_v27, %v120_v26 }
  0xab   :  { %921 = vmatmul.mubr.msk.bf16.vlgmr.msra.gmra.mxu0 %vm101_vm0, %v122_v28  ;;  %933 = vmatmul.mubr.msk.bf16.vlgmr.msra.gmra.mxu1 %vm101_vm0, %v122_v28 }
  0xac   :  { %938 = vmatprep.mubr.msk.bf16.mxu0 %vm1078_vm1, %v1077_v8  ;;  %876 = vmatpush3.bf16.msra.mxu1 %v1004_v42 }
  0xad   :  { %877 = vmatprep.subr.bf16.mxu1 %v1005_v43 }
  0xb0   :  { %878 = vmatpush3.bf16.msra.mxu1 %v1006_v44 }
  0xb1   :  { %879 = vmatprep.subr.bf16.mxu1 %v1007_v45 }
  0xb4   :  { %880 = vmatpush3.bf16.msra.mxu1 %v1008_v46 }
  0xb5   :  { %881 = vmatprep.subr.bf16.mxu1 %v1009_v47 }
  0xb8   :  { %882 = vmatpush3.bf16.msra.mxu1 %v1010_v48  ;;  %v1019_v48 = vld [vmem:[%s1324_s0 + $0xd8] sm:$0xff]  }
  0xb9   :  { %883 = vmatprep.subr.bf16.mxu1 %v1011_v49  ;;  %v1020_v49 = vld [vmem:[%s1324_s0 + $0xd0] sm:$0xff]  }
  0xbc   :  { %884 = vmatpush3.bf16.msra.mxu1 %v1012_v50  ;;  %v1021_v50 = vld [vmem:[%s1324_s0 + $0xc8] sm:$0xff]  }
  0xbd   :  { %885 = vmatprep.subr.bf16.mxu1 %v1013_v51  ;;  %v1022_v51 = vld [vmem:[%s1324_s0 + $0xc0] sm:$0xff]  }
  0xc0   :  { %886 = vmatpush3.bf16.msra.mxu1 %v1014_v52 }
  0xc1   :  { %887 = vmatprep.subr.bf16.mxu1 %v1015_v53 }
  0xc4   :  { %888 = vmatpush3.bf16.msra.mxu1 %v1016_v54 }
  0xc5   :  { %889 = vmatprep.subr.bf16.mxu1 %v1017_v55 }
  0xc8   :  { %890 = vmatpush3.bf16.msra.mxu1 %v1018_v56 }
  0xc9   :  { %974 = vmatprep.subr.bf16.mxu1 %v1077_v8 }
 0x16b   :  { %v184_v29 = vpop.f32.mrf.mxu0  ;;  %v1160_v30 = vpop.f32.mrf.mxu1 }
 0x16c   :  { %v838_v15 = vmul.f32 -1.442695, %v1160_v30 }
 0x16d   :  { %v922_v31 = vpop.f32.mrf.mxu0  ;;  %v934_v32 = vpop.f32.mrf.mxu1 }
 0x16e   :  { %1035 = vpow2.f32 %v838_v15 }
 0x16f   :  { %v187_v33 = vpop.f32.mrf.mxu0  ;;  %v1162_v34 = vpop.f32.mrf.mxu1 }
 0x170   :  { %v256_v35 = vpack.c.bf16 %v187_v33, %v184_v29  ;;  %v839_v16 = vmul.f32 -1.442695, %v1162_v34 }
 0x171   :  { %v923_v36 = vpop.f32.mrf.mxu0  ;;  %v935_v37 = vpop.f32.mrf.mxu1 }
 0x172   :  { %346 = vrot.lane.b32.xlu1 %v256_v35, %s1079_s5  ;;  %937 = vmatpush3.bf16.msra.mxu0 %v256_v35  ;;  %1037 = vpow2.f32 %v839_v16 }
 0x173   :  { %950 = vmatprep.subr.bf16.mxu0 %v1077_v8 }
 0x175   :  { %939 = vmatmul.mubr.msk.bf16.vlgmr.msra.gmra.mxu0 %vm272_vm2, %v1000_v38 }
 0x176   :  { %942 = vmatprep.mubr.msk.bf16.mxu0 %vm1078_vm1, %v1077_v8  ;;  %951 = vmatpush3.bf16.msra.mxu0 %v1019_v48 }
 0x177   :  { %952 = vmatprep.subr.bf16.mxu0 %v1077_v8 }
 0x17a   :  { %953 = vmatpush3.bf16.msra.mxu0 %v1020_v49 }
 0x17b   :  { %v1036_v17 = vpop.eup %1035  ;;  %954 = vmatprep.subr.bf16.mxu0 %v1077_v8 }
 0x17c   :  { %v503_v18 = vadd.f32 1.0, %v1036_v17 }
 0x17d   :  { %943 = vmatmul.mubr.msk.bf16.gmra.mxu0 %vm272_vm2, %v1001_v39 }
 0x17e   :  { %946 = vmatprep.mubr.msk.bf16.mxu0 %vm1078_vm1, %v1077_v8  ;;  %1039 = vrcp.f32 %v503_v18  ;;  %955 = vmatpush3.bf16.msra.mxu0 %v1021_v50 }
 0x17f   :  { %v1038_v19 = vpop.eup %1037  ;;  %956 = vmatprep.subr.bf16.mxu0 %v1077_v8 }
 0x180   :  { %v504_v20 = vadd.f32 1.0, %v1038_v19 }
 0x182   :  { %1041 = vrcp.f32 %v504_v20  ;;  %957 = vmatpush3.bf16.msra.mxu0 %v1022_v51 }
 0x183   :  { %962 = vmatprep.subr.bf16.mxu0 %v1077_v8 }
 0x185   :  { %947 = vmatmul.mubr.msk.bf16.gmra.mxu0 %vm272_vm2, %v1002_v40 }
 0x186   :  { %958 = vmatprep.mubr.msk.bf16.mxu0 %vm1078_vm1, %v1077_v8 }
 0x18b   :  { %v1040_v22 = vpop.eup %1039 }
 0x18c   :  { %v509_v27 = vmul.f32 %v1040_v22, %v1160_v30 }
 0x18f   :  { %v1042_v29 = vpop.eup %1041 }
 0x190   :  { %v510_v35 = vmul.f32 %v1042_v29, %v1162_v34 }
 0x1e4   :  { %v347_v10 = vpop.permute.xlu1 %346 }
 0x235   :  { %v316_v57 = vpop.f32.mrf.mxu0 }
 0x237   :  { %v940_v58 = vpop.f32.mrf.mxu0 }
 0x239   :  { %v319_v59 = vpop.f32.mrf.mxu0 }
 0x23a   :  { %v339_v60 = vpack.c.bf16 %v319_v59, %v316_v57 }
 0x23b   :  { %v941_v61 = vpop.f32.mrf.mxu0 }
 0x23d   :  { %v324_v62 = vpop.f32.mrf.mxu0 }
 0x23f   :  { %v944_v63 = vpop.f32.mrf.mxu0 }
 0x241   :  { %v327_v2 = vpop.f32.mrf.mxu0 }
 0x242   :  { %v340_v3 = vpack.c.bf16 %v327_v2, %v324_v62  ;;  %v841_v2 = vld [vmem:[%s1325_s1 + $0x3] ss:$0 sm:$0xff] }
 0x243   :  { %v945_v4 = vpop.f32.mrf.mxu0 }
 0x244   :  { %343 = vrot.lane.b32.xlu1 %v340_v3, %s1079_s5 }
 0x245   :  { %v332_v5 = vpop.f32.mrf.mxu0 }
 0x247   :  { %v948_v6 = vpop.f32.mrf.mxu0 }
 0x249   :  { %v335_v7 = vpop.f32.mrf.mxu0 }
 0x24a   :  { %v341_v9 = vpack.c.bf16 %v335_v7, %v332_v5  ;;  %v1023_v7 = vld [vmem:[%s1324_s0 + $0xf8] sm:$0xff]  }
 0x24b   :  { %v949_v11 = vpop.f32.mrf.mxu0 }
 0x24c   :  { %v354_v12 = vsel %vm101_vm0, %v341_v9, %v347_v10  ;;  %v1024_v9 = vld [vmem:[%s1324_s0 + $0xf0] sm:$0xff]   ;;  %v1025_v10 = vld [vmem:[%s1324_s0 + $0xe8] sm:$0xff]   ;;  %v1026_v11 = vld [vmem:[%s1324_s0 + $0xe0] sm:$0xff]  }
 0x24d   :  { %488 = vmatprep.mubr.bf16.mxu1 %v354_v12  ;;  %v1027_v12 = vld [vmem:[%s1324_s0 + $0x118] sm:$0xff]  }
 0x2b6   :  { %v344_v13 = vpop.permute.xlu1 %343 }
 0x2b7   :  { %v350_v14 = vsel %vm101_vm0, %v339_v60, %v344_v13  ;;  %v840_v60 = vld [vmem:[%s1325_s1 + $0x2] ss:$0 sm:$0xff]  ;;  %v842_v13 = vld [vmem:[%s1325_s1 + $0x4] ss:$0 sm:$0xff] }
 0x2b8   :  { %489 = vmatmul.mubr.bf16.vlgmr.msra.gmra.mxu1 %v350_v14 }
 0x2b9   :  { %982 = vmatprep.mubr.msk.bf16.mxu1 %vm1078_vm1, %v1077_v8  ;;  %975 = vmatpush3.bf16.msra.mxu1 %v1027_v12 }
 0x2ba   :  { %976 = vmatprep.subr.bf16.mxu1 %v1077_v8 }
 0x378   :  { %v891_v21 = vpop.f32.mrf.mxu1 }
 0x37a   :  { %v892_v24 = vpop.f32.mrf.mxu1 }
 0x37b   :  { %v893_v25 = vadd.f32 %v892_v24, %v891_v21 }
 0x37c   :  { %v894_v26 = vpop.f32.mrf.mxu1 }
 0x37d   :  { %v491_v28 = vadd.f32 %v893_v25, %v821_v23 }
 0x37e   :  { %v895_v31 = vpop.f32.mrf.mxu1 }
 0x37f   :  { %v1241_v32 = vmul.f32 %v509_v27, %v491_v28  ;;  %v896_v33 = vadd.f32 %v895_v31, %v894_v26 }
 0x381   :  { %v494_v36 = vadd.f32 %v896_v33, %v821_v23  ;;  %v513_v37 = vsel %vm101_vm0, %v1241_v32, 0.0  ;;  %v1028_v33 = vld [vmem:[%s1324_s0 + $0x110] sm:$0xff]  }
 0x382   :  { %514 = vadd.xlane.f32.xlu0 %v513_v37  ;;  %977 = vmatpush3.bf16.msra.mxu1 %v1028_v33  ;;  %v850_v37 = vld [vmem:[%s1325_s1 + $0x5] ss:$0 sm:$0xff] }
 0x383   :  { %v1246_v38 = vmul.f32 %v510_v35, %v494_v36  ;;  %978 = vmatprep.subr.bf16.mxu1 %v1077_v8  ;;  %v1029_v35 = vld [vmem:[%s1324_s0 + $0x108] sm:$0xff]   ;;  %v1030_v36 = vld [vmem:[%s1324_s0 + $0x100] sm:$0xff]   ;;  %s1080_s0 = smov [#allocation2]  }
 0x384   :  { %s793_s20 = sshll.u32 %s1080_s0, 4  ;;  %s794_s20 = int_to_ptr.vmem [resolvable:$true] %s793_s20 }
 0x385   :  { %v516_v39 = vsel %vm101_vm0, %v1246_v38, 0.0  ;;  %s1055_s1 = scalar_lea.vmem %s794_s20, 256  ;;  %p1060_p1 = scmp.lt.s32.totalorder %s794_s20, %s794_s20 }
 0x386   :  { %517 = vadd.xlane.f32.xlu1 %v516_v39  ;;  %979 = vmatpush3.bf16.msra.mxu1 %v1029_v35  ;;  %p1056_p0 = scmp.ne.s32.totalorder %s794_s20, %s1055_s1  ;;  %p1061_p2 = scmp.lt.s32.totalorder %s1055_s1, %s1055_s1 }
 0x387   :  { %980 = vmatprep.subr.bf16.mxu1 %v1077_v8 }
 0x388   :  { %p1062_p3 = por %p1061_p2, %p1060_p1 }
 0x38a   :  { %981 = vmatpush3.bf16.msra.mxu1 %v1030_v36  ;;  %p1063_p4 = pnand %p1062_p3, %p1056_p0 }
 0x40b   :  { %v515_v30 = vpop.xlane.xlu0 %514 }
 0x40c   :  { %v520_v40 = vmul.f32 0.015625, %v515_v30 }
 0x40e   :  { %v522_v41 = vsub.f32 %v1241_v32, %v520_v40 }
 0x40f   :  { %v518_v42 = vpop.xlane.xlu1 %517 }
 0x410   :  { %v521_v43 = vmul.f32 0.015625, %v518_v42  ;;  %v524_v44 = vmul.f32 %v522_v41, %v522_v41 }
 0x412   :  { %v523_v34 = vsub.f32 %v1246_v38, %v521_v43  ;;  %v526_v45 = vsel %vm101_vm0, %v524_v44, 0.0 }
 0x413   :  { %527 = vadd.xlane.f32.xlu0 %v526_v45 }
 0x414   :  { %v525_v46 = vmul.f32 %v523_v34, %v523_v34 }
 0x416   :  { %v529_v47 = vsel %vm101_vm0, %v525_v46, 0.0 }
 0x417   :  { %530 = vadd.xlane.f32.xlu0 %v529_v47 }
 0x49c   :  { %v528_v52 = vpop.xlane.xlu0 %527 }
 0x49d   :  { %v532_v53 = vmul.f32 0.015625, %v528_v52 }
 0x49f   :  { %v534_v54 = vadd.f32 1e-05, %v532_v53 }
 0x4a0   :  { %v531_v55 = vpop.xlane.xlu0 %530 }
 0x4a1   :  { %1043 = vrsqrt.f32 %v534_v54  ;;  %v533_v56 = vmul.f32 0.015625, %v531_v55 }
 0x4a3   :  { %v535_v57 = vadd.f32 1e-05, %v533_v56 }
 0x4a5   :  { %1045 = vrsqrt.f32 %v535_v57 }
 0x4ae   :  { %v1044_v58 = vpop.eup %1043 }
 0x4af   :  { %v538_v59 = vmul.f32 %v1044_v58, %v522_v41 }
 0x4b1   :  { %v544_v62 = vmul.f32 %v840_v60, %v538_v59 }
 0x4b2   :  { %v1046_v61 = vpop.eup %1045 }
 0x4b3   :  { %v539_v63 = vmul.f32 %v1046_v61, %v523_v34  ;;  %v550_v5 = vadd.f32 %v841_v2, %v544_v62 }
 0x4b5   :  { %v545_v3 = vmul.f32 %v840_v60, %v539_v63 }
 0x4b7   :  { %v551_v4 = vadd.f32 %v841_v2, %v545_v3 }
 0x4b9   :  { %v552_v6 = vpack.c.bf16 %v551_v4, %v550_v5 }
 0x4bb   :  { %959 = vmatmul.mubr.msk.bf16.vlgmr.msra.gmra.mxu0 %vm101_vm0, %v552_v6 }
 0x4bc   :  { %970 = vmatprep.mubr.msk.bf16.mxu0 %vm1078_vm1, %v1077_v8  ;;  %963 = vmatpush3.bf16.msra.mxu0 %v1023_v7 }
 0x4bd   :  { %964 = vmatprep.subr.bf16.mxu0 %v1077_v8 }
 0x4c0   :  { %965 = vmatpush3.bf16.msra.mxu0 %v1024_v9 }
 0x4c1   :  { %966 = vmatprep.subr.bf16.mxu0 %v1077_v8 }
 0x4c4   :  { %967 = vmatpush3.bf16.msra.mxu0 %v1025_v10 }
 0x4c5   :  { %968 = vmatprep.subr.bf16.mxu0 %v1077_v8 }
 0x4c8   :  { %969 = vmatpush3.bf16.msra.mxu0 %v1026_v11 }
 0x57b   :  { %v618_v14 = vpop.f32.mrf.mxu0 }
 0x57c   :  { %v619_v15 = vadd.f32 %v842_v13, %v618_v14 }
 0x57d   :  { %v960_v16 = vpop.f32.mrf.mxu0 }
 0x57e   :  { %v848_v17 = vmul.f32 -1.442695, %v619_v15 }
 0x57f   :  { %v621_v18 = vpop.f32.mrf.mxu0 }
 0x580   :  { %1047 = vpow2.f32 %v848_v17  ;;  %v622_v19 = vadd.f32 %v842_v13, %v621_v18 }
 0x581   :  { %v961_v20 = vpop.f32.mrf.mxu0 }
 0x582   :  { %v849_v21 = vmul.f32 -1.442695, %v622_v19 }
 0x584   :  { %1049 = vpow2.f32 %v849_v21 }
 0x58d   :  { %v1048_v22 = vpop.eup %1047 }
 0x58e   :  { %v631_v23 = vadd.f32 1.0, %v1048_v22 }
 0x590   :  { %1051 = vrcp.f32 %v631_v23 }
 0x591   :  { %v1050_v24 = vpop.eup %1049 }
 0x592   :  { %v632_v25 = vadd.f32 1.0, %v1050_v24 }
 0x594   :  { %1053 = vrcp.f32 %v632_v25 }
 0x59d   :  { %v1052_v26 = vpop.eup %1051 }
 0x59e   :  { %v637_v28 = vmul.f32 %v1052_v26, %v619_v15 }
 0x5a1   :  { %v1054_v27 = vpop.eup %1053 }
 0x5a2   :  { %v638_v29 = vmul.f32 %v1054_v27, %v622_v19 }
 0x5a4   :  { %v639_v31 = vpack.c.bf16 %v638_v29, %v637_v28 }
 0x5a6   :  { %971 = vmatmul.mubr.msk.bf16.vlgmr.msra.gmra.mxu0 %vm101_vm0, %v639_v31 }
 0x666   :  { %v705_v39 = vpop.f32.mrf.mxu0 }
 0x667   :  { %v706_v40 = vadd.f32 %v850_v37, %v705_v39 }
 0x668   :  { %v972_v30 = vpop.f32.mrf.mxu0 }
 0x669   :  { %v712_v44 = vadd.f32 %v706_v40, %v1241_v32 }
 0x66a   :  { %v708_v41 = vpop.f32.mrf.mxu0 }
 0x66b   :  { %v709_v42 = vadd.f32 %v850_v37, %v708_v41 }
 0x66c   :  { %v973_v43 = vpop.f32.mrf.mxu0 }
 0x66d   :  { %v713_v34 = vadd.f32 %v709_v42, %v1246_v38 }
 0x66f   :  { %v714_v8 = vpack.c.bf16 %v713_v34, %v712_v44 }
 0x671   :  { %983 = vmatmul.mubr.msk.bf16.vlgmr.msra.gmra.mxu1 %vm101_vm0, %v714_v8 }
 0x731   :  { %v776_v45 = vpop.f32.mrf.mxu1 }
 0x732   :  { %v783_v46 = vadd.f32 %v776_v45, %v1101_v0 }
 0x733   :  { %v984_v47 = vpop.f32.mrf.mxu1 }
 0x734   :  { %786 = vst.msk [vmem:[#allocation2] sm:$0xff] %vm785_vm3, %v783_v46 }
 0x735   :  { %v779_v48 = vpop.f32.mrf.mxu1 }
 0x736   :  { %v784_v49 = vadd.f32 %v779_v48, %v1106_v1 }
 0x737   :  { %v985_v50 = vpop.f32.mrf.mxu1 }
 0x738   :  { %787 = vst.msk [vmem:[#allocation2 + $0x8] sm:$0xff] %vm785_vm3, %v784_v49 }
 0x739   :  { %1066 = shalt.err (!%p1063_p4)
}
 0x73a   :  { %s1081_s21 = smov 128   ;;  %s1082_s22 = smov 8  }
 0x73b   :  { %799 = dma.vmem_to_hbm [thread:$0]  %s794_s20, 256, %s1326_s2, [#allocation3], %s1081_s21, %s1081_s21, %s1082_s22  }
 0x73c   :  { %1075 = dma.done.wait [#allocation3], 256  }
 0x73d   :  { %1076 = vsyncadd [#allocation3], 4294967040 }
 0x73e   :  { %803 = vsyncpa [#allocation3], 1 }

</bundles_post_ra>
